<compile_context>
chip_gen: v7x
topology: tpu7x:2x2x1
jax: 0.10.0
libtpu: 0.0.40
codegen_flags: <defaults>
</compile_context>

<pallas_src>
import functools

import jax
import jax.numpy as jnp
from jax.experimental import pallas as pl
from jax.experimental.pallas import tpu as pltpu

_EPS = float(jnp.finfo(jnp.float32).eps)
_TARGET_TILE_ELEMS = 256 * 1024          # ~1 MiB of f32 per tile
_VMEM_LIMIT = 32 * 1024 * 1024           # safe on v5e/v6e (128 MiB) and v7x (64 MiB)


# ---------------------------------------------------------------------------
# Layout planning: choose (lanes, rows, block_rows, pad) for a flat tensor.
# ---------------------------------------------------------------------------
def _plan(n):
    lanes = 128
    for cand in (1024, 512, 256, 128):
        if n % cand == 0:
            lanes = cand
            break
    pad = (-n) % lanes                    # nonzero only if n % 128 != 0
    rows = (n + pad) // lanes
    target_rows = max(8, (_TARGET_TILE_ELEMS // lanes) // 8 * 8)
    if rows <= 8:
        block_rows = rows                 # block dim == full array dim (allowed)
    else:
        block_rows = min(target_rows, (rows // 8) * 8)
    return lanes, rows, block_rows, pad


# ---------------------------------------------------------------------------
# Kernel 1: global min / max reduction.
#   Per-step: pure element-wise min/max into full-tile VMEM accumulators (VPU).
#   Final step: single XLU reduce + one (1,1) store each.
# ---------------------------------------------------------------------------
def _minmax_kernel(x_ref, min_ref, max_ref, acc_min, acc_max, *,
                   valid_rows, block_rows):
    @pl.when(pl.program_id(0) == 0)
    def _():
        acc_min[...] = jnp.full_like(acc_min, jnp.inf)
        acc_max[...] = jnp.full_like(acc_max, -jnp.inf)

    tile = x_ref[...].astype(jnp.float32)
    if valid_rows % block_rows != 0:
        # Last grid step reads past the array edge; mask those rows out.
        row0 = pl.program_id(0) * block_rows
        ridx = row0 + jax.lax.broadcasted_iota(jnp.int32, tile.shape, 0)
        in_bounds = ridx < valid_rows
        tile_min = jnp.where(in_bounds, tile, jnp.inf)
        tile_max = jnp.where(in_bounds, tile, -jnp.inf)
    else:
        tile_min = tile
        tile_max = tile

    acc_min[...] = jnp.minimum(acc_min[...], tile_min)
    acc_max[...] = jnp.maximum(acc_max[...], tile_max)

    @pl.when(pl.program_id(0) == pl.num_programs(0) - 1)
    def _():
        min_ref[...] = jnp.min(acc_min[...]).reshape(1, 1)
        max_ref[...] = jnp.max(acc_max[...]).reshape(1, 1)


def _global_min_max(slab, block_rows):
    rows, lanes = slab.shape
    grid = (pl.cdiv(rows, block_rows),)
    kern = functools.partial(_minmax_kernel, valid_rows=rows,
                             block_rows=block_rows)
    mn, mx = pl.pallas_call(
        kern,
        out_shape=(
            jax.ShapeDtypeStruct((1, 1), jnp.float32),
            jax.ShapeDtypeStruct((1, 1), jnp.float32),
        ),
        grid_spec=pltpu.PrefetchScalarGridSpec(
            num_scalar_prefetch=0,
            grid=grid,
            in_specs=[pl.BlockSpec((block_rows, lanes), lambda i: (i, 0))],
            out_specs=(
                pl.BlockSpec((1, 1), lambda i: (0, 0)),
                pl.BlockSpec((1, 1), lambda i: (0, 0)),
            ),
            scratch_shapes=[
                pltpu.VMEM((block_rows, lanes), jnp.float32),
                pltpu.VMEM((block_rows, lanes), jnp.float32),
            ],
        ),
        compiler_params=pltpu.CompilerParams(
            dimension_semantics=("arbitrary",),
            vmem_limit_bytes=_VMEM_LIMIT),
    )(slab)
    return mn[0, 0], mx[0, 0]


# ---------------------------------------------------------------------------
# Kernel 2: elementwise fake-quantize  y = (clip(round(x*inv_s + zp)) - zp) * s
#   qparams (SMEM, f32[3]) = [scale, 1/scale, zero_point]  (reciprocal hoisted)
#   Native-dtype loads/stores, f32 math inside.
# ---------------------------------------------------------------------------
def _fake_quant_kernel(qp_ref, x_ref, o_ref, *, quant_min, quant_max):
    s = qp_ref[0]
    inv_s = qp_ref[1]
    zp = qp_ref[2]
    xf = x_ref[...].astype(jnp.float32)
    q = jnp.round(xf * inv_s + zp)
    q = jnp.clip(q, float(quant_min), float(quant_max))
    o_ref[...] = ((q - zp) * s).astype(o_ref.dtype)


def _fake_quantize_2d(slab, qparams, quant_min, quant_max, block_rows):
    rows, lanes = slab.shape
    grid = (pl.cdiv(rows, block_rows),)
    kern = functools.partial(_fake_quant_kernel,
                             quant_min=quant_min, quant_max=quant_max)
    return pl.pallas_call(
        kern,
        out_shape=jax.ShapeDtypeStruct((rows, lanes), slab.dtype),
        grid_spec=pltpu.PrefetchScalarGridSpec(
            num_scalar_prefetch=0,
            grid=grid,
            in_specs=[
                pl.BlockSpec(memory_space=pltpu.MemorySpace.SMEM),  # qparams (3,)
                pl.BlockSpec((block_rows, lanes), lambda i: (i, 0)),
            ],
            out_specs=pl.BlockSpec((block_rows, lanes), lambda i: (i, 0)),
        ),
        compiler_params=pltpu.CompilerParams(
            dimension_semantics=("parallel",),     # independent tiles (v7x 2-core)
            vmem_limit_bytes=_VMEM_LIMIT),
    )(qparams, slab)


# ---------------------------------------------------------------------------
# Whole forward (kernels + scalar glue) under a single jit.
# ---------------------------------------------------------------------------
@functools.partial(
    jax.jit,
    static_argnames=("quant_min", "quant_max", "averaging_constant", "first"))
def _forward(x, min_state, max_state, *, quant_min, quant_max,
             averaging_constant, first):
    orig_shape = x.shape
    flat = x.reshape(-1)
    n = flat.shape[0]
    lanes, rows, block_rows, pad = _plan(n)
    if pad:
        # TODO(synk): only hit when numel % 128 != 0; pads with flat[0]
        # (min/max-safe) at the cost of one extra copy of the tensor.
        flat = jnp.concatenate([flat, jnp.broadcast_to(flat[0], (pad,))])
    slab = flat.reshape(rows, lanes)

    # 1) global min/max reduction (Pallas kernel, native dtype in, f32 out)
    batch_min, batch_max = _global_min_max(slab, block_rows)

    # 2) EMA state update + scalar scale / zero-point math
    if first:
        new_min, new_max = batch_min, batch_max
    else:
        c = jnp.float32(averaging_constant)
        new_min = min_state + c * (batch_min - min_state)
        new_max = max_state + c * (batch_max - max_state)

    mn = jnp.minimum(new_min, 0.0)
    mx = jnp.maximum(new_max, 0.0)
    scale = jnp.maximum((mx - mn) / float(quant_max - quant_min),
                        jnp.float32(_EPS))
    zero_point = jnp.clip(quant_min - jnp.round(mn / scale),
                          float(quant_min), float(quant_max))
    qparams = jnp.stack([scale, 1.0 / scale, zero_point]).astype(jnp.float32)

    # 3) elementwise fake quantization (Pallas kernel, native-dtype I/O)
    out_slab = _fake_quantize_2d(slab, qparams, quant_min, quant_max,
                                 block_rows)
    if pad:
        out = out_slab.reshape(-1)[:n].reshape(orig_shape)
    else:
        out = out_slab.reshape(orig_shape)
    return out, new_min, new_max, scale, zero_point


class FakeQuantizer:
    """Stateful per-tensor fake quantizer (EMA min/max), Pallas-backed."""

    def __init__(self, quant_min, quant_max):
        self.quant_min = int(quant_min)
        self.quant_max = int(quant_max)
        self.min_val = None
        self.max_val = None
        self.averaging_constant = 0.01
        self.eps = _EPS
        self.scale = None
        self.zero_point = None

    def __call__(self, x):
        first = self.min_val is None or self.max_val is None
        zero = jnp.float32(0.0)
        out, new_min, new_max, scale, zp = _forward(
            x,
            zero if first else self.min_val,
            zero if first else self.max_val,
            quant_min=self.quant_min,
            quant_max=self.quant_max,
            averaging_constant=float(self.averaging_constant),
            first=first,
        )
        self.min_val, self.max_val = new_min, new_max
        self.scale, self.zero_point = scale, zp
        return out


# ---------------------------------------------------------------------------
# Pure-JAX reference for a sanity check (first call: min/max == batch stats).
# ---------------------------------------------------------------------------
def _reference(x, quant_min, quant_max):
    xf = x.astype(jnp.float32)
    mn = jnp.minimum(jnp.min(xf), 0.0)
    mx = jnp.maximum(jnp.max(xf), 0.0)
    scale = jnp.maximum((mx - mn) / float(quant_max - quant_min),
                        jnp.float32(_EPS))
    zp = jnp.clip(quant_min - jnp.round(mn / scale),
                  float(quant_min), float(quant_max))
    q = jnp.clip(jnp.round(xf / scale + zp),
                 float(quant_min), float(quant_max))
    return ((q - zp) * scale).astype(x.dtype)


if __name__ == "__main__":
    key = jax.random.PRNGKey(0)

    # Test 1: nice shape (numel multiple of 1024 -> no padding, 1 block).
    x = jax.random.normal(key, (2, 4, 16, 16), dtype=jnp.float32) * 3.0
    fq = FakeQuantizer(quant_min=0, quant_max=255)
    y = jax.block_until_ready(fq(x))
    y_ref = _reference(x, 0, 255)
    assert y.shape == x.shape and y.dtype == x.dtype
    assert jnp.allclose(y, y_ref, atol=1e-5, rtol=1e-5), "mismatch vs reference"

    # Second call exercises the EMA (non-first) path; stats unchanged for same x.
    y2 = jax.block_until_ready(fq(x))
    assert jnp.allclose(y2, y_ref, atol=1e-5, rtol=1e-5), "EMA path mismatch"

    # Test 2: awkward shape (numel % 128 != 0) -> padding + partial last block.
    x_odd = jax.random.normal(jax.random.PRNGKey(1), (3, 5, 7, 11),
                              dtype=jnp.float32) * 2.0
    fq2 = FakeQuantizer(quant_min=-128, quant_max=127)
    y_odd = jax.block_until_ready(fq2(x_odd))
    y_odd_ref = _reference(x_odd, -128, 127)
    assert y_odd.shape == x_odd.shape
    assert jnp.allclose(y_odd, y_odd_ref, atol=1e-5, rtol=1e-5), \
        "mismatch vs reference (odd shape)"

    print("KERNEL_OK")
</pallas_src>

<mosaic_0001>
module attributes {stable_mosaic.version = 11 : i64} {
  func.func @_fake_quant_kernel(%arg0: i32, %arg1: memref<3xf32, #tpu.memory_space<smem>>, %arg2: memref<2x1024xf32, #tpu.memory_space<vmem>>, %arg3: memref<2x1024xf32, #tpu.memory_space<vmem>>) attributes {dimension_semantics = [#tpu.dimension_semantics<parallel>], iteration_bounds = array<i64: 1>, scalar_prefetch = 0 : i64, scratch_operands = 0 : i64, tpu.core_type = #tpu.core_type<tc>, window_params = [{transform_indices = @transform_0, window_bounds = array<i64: 3>}, {transform_indices = @transform_1, window_bounds = array<i64: 2, 1024>}, {transform_indices = @transform_2, window_bounds = array<i64: 2, 1024>}]} {
    %c0 = arith.constant 0 : index
    %0 = memref.load %arg1[%c0] : memref<3xf32, #tpu.memory_space<smem>>
    %c1 = arith.constant 1 : index
    %1 = memref.load %arg1[%c1] : memref<3xf32, #tpu.memory_space<smem>>
    %c2 = arith.constant 2 : index
    %2 = memref.load %arg1[%c2] : memref<3xf32, #tpu.memory_space<smem>>
    %c0_0 = arith.constant 0 : index
    %c0_1 = arith.constant 0 : index
    %3 = vector.load %arg2[%c0_0, %c0_1] : memref<2x1024xf32, #tpu.memory_space<vmem>>, vector<2x1024xf32>
    %4 = vector.broadcast %1 : f32 to vector<2x1024xf32>
    %5 = arith.mulf %3, %4 : vector<2x1024xf32>
    %6 = vector.broadcast %2 : f32 to vector<2x1024xf32>
    %7 = arith.addf %5, %6 : vector<2x1024xf32>
    %8 = math.roundeven %7 : vector<2x1024xf32>
    %cst = arith.constant 0.000000e+00 : f32
    %cst_2 = arith.constant 2.550000e+02 : f32
    %9 = vector.broadcast %cst : f32 to vector<2x1024xf32>
    %10 = arith.maximumf %9, %8 : vector<2x1024xf32>
    %11 = vector.broadcast %cst_2 : f32 to vector<2x1024xf32>
    %12 = arith.minimumf %11, %10 : vector<2x1024xf32>
    %13 = vector.broadcast %2 : f32 to vector<2x1024xf32>
    %14 = arith.subf %12, %13 : vector<2x1024xf32>
    %15 = vector.broadcast %0 : f32 to vector<2x1024xf32>
    %16 = arith.mulf %14, %15 : vector<2x1024xf32>
    %c0_3 = arith.constant 0 : index
    %c0_4 = arith.constant 0 : index
    %17 = vector.load %arg3[%c0_3, %c0_4] : memref<2x1024xf32, #tpu.memory_space<vmem>>, vector<2x1024xf32>
    tpu.vector_store %arg3[%c0_3, %c0_4], %16 {strides = array<i32>} : memref<2x1024xf32, #tpu.memory_space<vmem>>, vector<2x1024xf32>,
    return
  }
  func.func @transform_0(%arg0: i32) -> i32 {
    %c0_i32 = arith.constant 0 : i32
    %c0_i32_0 = arith.constant 0 : i32
    return %c0_i32 : i32
  }
  func.func @transform_1(%arg0: i32) -> (i32, i32) {
    %c0_i32 = arith.constant 0 : i32
    %c0_i32_0 = arith.constant 0 : i32
    return %arg0, %c0_i32 : i32, i32
  }
  func.func @transform_2(%arg0: i32) -> (i32, i32) {
    %c0_i32 = arith.constant 0 : i32
    %c0_i32_0 = arith.constant 0 : i32
    return %arg0, %c0_i32 : i32, i32
  }
}

module attributes {stable_mosaic.version = 11 : i64} {
  func.func @_minmax_kernel(%arg0: i32, %arg1: memref<2x1024xf32, #tpu.memory_space<vmem>>, %arg2: memref<1x1xf32, #tpu.memory_space<vmem>>, %arg3: memref<1x1xf32, #tpu.memory_space<vmem>>, %arg4: memref<2x1024xf32, #tpu.memory_space<vmem>>, %arg5: memref<2x1024xf32, #tpu.memory_space<vmem>>) attributes {dimension_semantics = [#tpu.dimension_semantics<arbitrary>], iteration_bounds = array<i64: 1>, scalar_prefetch = 0 : i64, scratch_operands = 2 : i64, tpu.core_type = #tpu.core_type<tc>, window_params = [{transform_indices = @transform_0, window_bounds = array<i64: 2, 1024>}, {pipeline_mode = #tpu.pipeline_mode<synchronous>, transform_indices = @transform_1, window_bounds = array<i64: 1, 1>}, {pipeline_mode = #tpu.pipeline_mode<synchronous>, transform_indices = @transform_2, window_bounds = array<i64: 1, 1>}]} {
    %c0_i32 = arith.constant 0 : i32
    %0 = arith.cmpi eq, %arg0, %c0_i32 : i32
    %1 = arith.extui %0 : i1 to i32
    %c0_i32_0 = arith.constant 0 : i32
    %2 = arith.cmpi ne, %1, %c0_i32_0 : i32
    scf.if %2 {
      %cst = arith.constant 0x7F800000 : f32
      %13 = vector.broadcast %cst : f32 to vector<2x1024xf32>
      %c0_12 = arith.constant 0 : index
      %c0_13 = arith.constant 0 : index
      %14 = vector.load %arg4[%c0_12, %c0_13] : memref<2x1024xf32, #tpu.memory_space<vmem>>, vector<2x1024xf32>
      tpu.vector_store %arg4[%c0_12, %c0_13], %13 {strides = array<i32>} : memref<2x1024xf32, #tpu.memory_space<vmem>>, vector<2x1024xf32>,
      %cst_14 = arith.constant 0xFF800000 : f32
      %15 = vector.broadcast %cst_14 : f32 to vector<2x1024xf32>
      %c0_15 = arith.constant 0 : index
      %c0_16 = arith.constant 0 : index
      %16 = vector.load %arg5[%c0_15, %c0_16] : memref<2x1024xf32, #tpu.memory_space<vmem>>, vector<2x1024xf32>
      tpu.vector_store %arg5[%c0_15, %c0_16], %15 {strides = array<i32>} : memref<2x1024xf32, #tpu.memory_space<vmem>>, vector<2x1024xf32>,
    } else {
    }
    %c0 = arith.constant 0 : index
    %c0_1 = arith.constant 0 : index
    %3 = vector.load %arg1[%c0, %c0_1] : memref<2x1024xf32, #tpu.memory_space<vmem>>, vector<2x1024xf32>
    %c0_2 = arith.constant 0 : index
    %c0_3 = arith.constant 0 : index
    %4 = vector.load %arg4[%c0_2, %c0_3] : memref<2x1024xf32, #tpu.memory_space<vmem>>, vector<2x1024xf32>
    %5 = arith.minimumf %4, %3 : vector<2x1024xf32>
    %c0_4 = arith.constant 0 : index
    %c0_5 = arith.constant 0 : index
    %6 = vector.load %arg4[%c0_4, %c0_5] : memref<2x1024xf32, #tpu.memory_space<vmem>>, vector<2x1024xf32>
    tpu.vector_store %arg4[%c0_4, %c0_5], %5 {strides = array<i32>} : memref<2x1024xf32, #tpu.memory_space<vmem>>, vector<2x1024xf32>,
    %c0_6 = arith.constant 0 : index
    %c0_7 = arith.constant 0 : index
    %7 = vector.load %arg5[%c0_6, %c0_7] : memref<2x1024xf32, #tpu.memory_space<vmem>>, vector<2x1024xf32>
    %8 = arith.maximumf %7, %3 : vector<2x1024xf32>
    %c0_8 = arith.constant 0 : index
    %c0_9 = arith.constant 0 : index
    %9 = vector.load %arg5[%c0_8, %c0_9] : memref<2x1024xf32, #tpu.memory_space<vmem>>, vector<2x1024xf32>
    tpu.vector_store %arg5[%c0_8, %c0_9], %8 {strides = array<i32>} : memref<2x1024xf32, #tpu.memory_space<vmem>>, vector<2x1024xf32>,
    %c0_i32_10 = arith.constant 0 : i32
    %10 = arith.cmpi eq, %arg0, %c0_i32_10 : i32
    %11 = arith.extui %10 : i1 to i32
    %c0_i32_11 = arith.constant 0 : i32
    %12 = arith.cmpi ne, %11, %c0_i32_11 : i32
    scf.if %12 {
      %c0_12 = arith.constant 0 : index
      %c0_13 = arith.constant 0 : index
      %13 = vector.load %arg4[%c0_12, %c0_13] : memref<2x1024xf32, #tpu.memory_space<vmem>>, vector<2x1024xf32>
      %14 = vector.shape_cast %13 : vector<2x1024xf32> to vector<1x2x1024xf32>
      %cst = arith.constant dense<0x7F800000> : vector<1xf32>
      %15 = vector.multi_reduction <minimumf>, %14, %cst [1, 2] : vector<1x2x1024xf32> to vector<1xf32>
      %16 = vector.shape_cast %15 : vector<1xf32> to vector<1x1x1xf32>
      %17 = vector.extract %16[0, 0, 0] : f32 from vector<1x1x1xf32>
      %18 = vector.broadcast %17 : f32 to vector<1x1xf32>
      %c0_14 = arith.constant 0 : index
      %c0_15 = arith.constant 0 : index
      %19 = vector.load %arg2[%c0_14, %c0_15] : memref<1x1xf32, #tpu.memory_space<vmem>>, vector<1x1xf32>
      tpu.vector_store %arg2[%c0_14, %c0_15], %18 {strides = array<i32>} : memref<1x1xf32, #tpu.memory_space<vmem>>, vector<1x1xf32>,
      %c0_16 = arith.constant 0 : index
      %c0_17 = arith.constant 0 : index
      %20 = vector.load %arg5[%c0_16, %c0_17] : memref<2x1024xf32, #tpu.memory_space<vmem>>, vector<2x1024xf32>
      %21 = vector.shape_cast %20 : vector<2x1024xf32> to vector<1x2x1024xf32>
      %cst_18 = arith.constant dense<0xFF800000> : vector<1xf32>
      %22 = vector.multi_reduction <maximumf>, %21, %cst_18 [1, 2] : vector<1x2x1024xf32> to vector<1xf32>
      %23 = vector.shape_cast %22 : vector<1xf32> to vector<1x1x1xf32>
      %24 = vector.extract %23[0, 0, 0] : f32 from vector<1x1x1xf32>
      %25 = vector.broadcast %24 : f32 to vector<1x1xf32>
      %c0_19 = arith.constant 0 : index
      %c0_20 = arith.constant 0 : index
      %26 = vector.load %arg3[%c0_19, %c0_20] : memref<1x1xf32, #tpu.memory_space<vmem>>, vector<1x1xf32>
      tpu.vector_store %arg3[%c0_19, %c0_20], %25 {strides = array<i32>} : memref<1x1xf32, #tpu.memory_space<vmem>>, vector<1x1xf32>,
    } else {
    }
    return
  }
  func.func @transform_0(%arg0: i32) -> (i32, i32) {
    %c0_i32 = arith.constant 0 : i32
    %c0_i32_0 = arith.constant 0 : i32
    return %arg0, %c0_i32 : i32, i32
  }
  func.func @transform_1(%arg0: i32) -> (i32, i32) {
    %c0_i32 = arith.constant 0 : i32
    %c0_i32_0 = arith.constant 0 : i32
    %c0_i32_1 = arith.constant 0 : i32
    return %c0_i32, %c0_i32_0 : i32, i32
  }
  func.func @transform_2(%arg0: i32) -> (i32, i32) {
    %c0_i32 = arith.constant 0 : i32
    %c0_i32_0 = arith.constant 0 : i32
    %c0_i32_1 = arith.constant 0 : i32
    return %c0_i32, %c0_i32_0 : i32, i32
  }
}

</mosaic_0001>

<bundles_post_ra>
// kernel: _forward.3
= control target key start
LH: loop header
LB: loop body
LE: loop exit
PB: predicated region body
PF: predicated region fallthrough
CT: control target
= control target key end

     0   :  { %7 = vsyncpa [#allocation3], 0  ;;  %s103_s0 = inlined_call_operand.vmem [shape: f32[3], index: 0, kind: input, shape index: {}]   ;;  %s104_s1 = inlined_call_operand.vmem [shape: f32[2,1024], index: 1, kind: input, shape index: {}]   ;;  %s105_s2 = inlined_call_operand.vmem [shape: f32[2,1024], index: 2, kind: output, shape index: {}]  }
   0x1   :  { %s14_s11 = sshll.u32 %s103_s0, 4  ;;  %s15_s11 = int_to_ptr.vmem [resolvable:$true] %s14_s11 }
   0x2   :  { %s58_s12 = scalar_lea.vmem %s15_s11, 16  ;;  %p63_p1 = scmp.lt.s32.totalorder %s15_s11, %s15_s11 }
   0x3   :  { %p59_p0 = scmp.ne.s32.totalorder %s15_s11, %s58_s12  ;;  %p64_p2 = scmp.lt.s32.totalorder %s58_s12, %s58_s12 }
   0x5   :  { %p65_p3 = por %p64_p2, %p63_p1 }
   0x7   :  { %p66_p4 = pnand %p65_p3, %p59_p0 }
   0x9   :  { %69 = shalt.err (!%p66_p4)
}
   0xa   :  { %s72_s13 = smov [#allocation2]  }
   0xb   :  { %17 = dma.vmem_to_smem %s15_s11, 16, %s72_s13, [#allocation3]  }
   0xc   :  { %70 = dma.done.wait [#allocation3], 16  }
   0xd   :  { %71 = vsyncadd [#allocation3], 4294967280 }
   0xe   :  { %23 = sfence }
   0xf   :  { %s53_s14 = sld [smem:[#allocation2 + $0x1]]  ;;  %s54_s15 = sld [smem:[#allocation2 + $0x2]]  ;;  %v27_v0 = vld [vmem:[%s104_s1] sm:$0xff]  ;;  %v28_v1 = vld [vmem:[%s104_s1 + $0x8] sm:$0xff] }
  0x10   :  { %s24_s19 = sld [smem:[#allocation2]] }
  0x15   :  { %v29_v2 = vstv %s53_s14  ;;  %v32_v4 = vstv %s54_s15 }
  0x16   :  { %v30_v3 = vmul.f32 %v29_v2, %v27_v0  ;;  %v31_v5 = vmul.f32 %v29_v2, %v28_v1  ;;  %v43_v14 = vstv %s24_s19 }
  0x18   :  { %v33_v6 = vadd.f32 %v32_v4, %v30_v3  ;;  %v34_v7 = vadd.f32 %v32_v4, %v31_v5 }
  0x1a   :  { %v55_v8 = vround.rtne.f32 %v33_v6  ;;  %v56_v9 = vround.rtne.f32 %v34_v7 }
  0x1c   :  { %v37_v10 = vmax.f32 %v55_v8, 0.0  ;;  %v38_v11 = vmax.f32 %v56_v9, 0.0 }
  0x1e   :  { %v39_v12 = vmin.f32 %v37_v10, 255.0  ;;  %v40_v13 = vmin.f32 %v38_v11, 255.0 }
  0x20   :  { %v41_v15 = vsub.f32 %v39_v12, %v32_v4  ;;  %v42_v16 = vsub.f32 %v40_v13, %v32_v4 }
  0x22   :  { %v44_v17 = vmul.f32 %v43_v14, %v41_v15  ;;  %v45_v18 = vmul.f32 %v43_v14, %v42_v16 }
  0x24   :  { %46 = vst [vmem:[%s105_s2] sm:$0xff] %v44_v17  ;;  %47 = vst [vmem:[%s105_s2 + $0x8] sm:$0xff] %v45_v18 }
  0x25   :  { %52 = vsyncpa [#allocation3], 1 }

// kernel: _forward.2
= control target key start
LH: loop header
LB: loop body
LE: loop exit
PB: predicated region body
PF: predicated region fallthrough
CT: control target
= control target key end

     0   :  { %8 = vsyncpa [#allocation5], 0  ;;  %v45_v2 = vlaneseq  ;;  %v268_v3 = vmov 1983009808   ;;  %s334_s0 = inlined_call_operand.vmem [shape: f32[2,1024], index: 0, kind: input, shape index: {}]   ;;  %s335_s1 = inlined_call_operand.hbm [shape: f32[1,1], index: 1, kind: output, shape index: {0}]   ;;  %s336_s2 = inlined_call_operand.hbm [shape: f32[1,1], index: 2, kind: output, shape index: {1}]  }
   0x1   :  { %v20_v0 = vld [vmem:[%s334_s0] sm:$0xff]  ;;  %v21_v1 = vld [vmem:[%s334_s0 + $0x8] sm:$0xff]  ;;  %v43_v4 = vunpack.c.l.s4 %v268_v3 }
   0x2   :  { %9 = vsyncpa [#allocation7], 0  ;;  %v46_v5 = vshrl.u32 %v45_v2, 7  ;;  %v41_v6 = vcombine.high %v20_v0, %v20_v0  ;;  %v58_v8 = vcombine.high %v21_v1, %v21_v1  ;;  %vm83_vm0 = vcmask 1041408   ;;  %s269_s0 = smov [#allocation4]   ;;  %s270_s15 = smov [#allocation6]  }
   0x3   :  { %v44_v7 = vunpack.c.0.s8 %v43_v4  ;;  %s189_s13 = sshll.u32 %s269_s0, 4  ;;  %vm109_vm1 = vcmask 0   ;;  %s199_s16 = sshll.u32 %s270_s15, 4  ;;  %s190_s13 = int_to_ptr.vmem [resolvable:$true] %s189_s13  ;;  %s200_s16 = int_to_ptr.vmem [resolvable:$true] %s199_s16 }
   0x4   :  { %s220_s17 = scalar_lea.vmem %s190_s13, 16  ;;  %s224_s18 = scalar_lea.vmem %s190_s13, 32 }
   0x5   :  { %v47_v9 = vsub.s32 %v44_v7, %v46_v5  ;;  %p221_p0 = scmp.ne.s32.totalorder %s190_s13, %s220_s17  ;;  %p225_p1 = scmp.lt.s32.totalorder %s190_s13, %s190_s13 }
   0x6   :  { %p226_p2 = scmp.lt.s32.totalorder %s224_s18, %s220_s17 }
   0x7   :  { %v48_v10 = vrot.slane %v20_v0, %v47_v9  ;;  %v55_v11 = vrot.slane %v41_v6, %v47_v9  ;;  %v65_v12 = vrot.slane %v21_v1, %v47_v9  ;;  %v72_v13 = vrot.slane %v58_v8, %v47_v9 }
   0x8   :  { %p227_p3 = por %p226_p2, %p225_p1 }
   0x9   :  { %v56_v14 = vcombine.high %v48_v10, %v48_v10  ;;  %v57_v15 = vcombine.high %v55_v11, %v55_v11  ;;  %v73_v16 = vcombine.high %v65_v12, %v65_v12  ;;  %v74_v17 = vcombine.high %v72_v13, %v72_v13 }
   0xa   :  { %v84_v18 = vsel %vm83_vm0, %v48_v10, inf  ;;  %v86_v19 = vsel %vm83_vm0, %v55_v11, inf  ;;  %v88_v20 = vsel %vm83_vm0, %v65_v12, inf  ;;  %v92_v21 = vsel %vm83_vm0, %v72_v13, inf  ;;  %p228_p4 = pnand %p227_p3, %p221_p0 }
   0xb   :  { %v85_v22 = vsel %vm83_vm0, %v56_v14, inf  ;;  %v87_v23 = vsel %vm83_vm0, %v57_v15, inf  ;;  %v89_v24 = vmin.f32 %v84_v18, %v88_v20  ;;  %v90_v25 = vsel %vm83_vm0, %v73_v16, inf }
   0xc   :  { %v91_v26 = vmin.f32 %v85_v22, %v90_v25  ;;  %v93_v27 = vmin.f32 %v86_v19, %v92_v21  ;;  %v94_v28 = vsel %vm83_vm0, %v74_v17, inf  ;;  %v157_v29 = vsel %vm83_vm0, %v48_v10, -inf }
   0xd   :  { %v95_v30 = vmin.f32 %v87_v23, %v94_v28  ;;  %v158_v31 = vsel %vm83_vm0, %v56_v14, -inf  ;;  %v159_v32 = vsel %vm83_vm0, %v55_v11, -inf  ;;  %v160_v33 = vsel %vm83_vm0, %v57_v15, -inf }
   0xe   :  { %v96_v34 = vmin.f32 %v89_v24, %v91_v26  ;;  %v161_v35 = vsel %vm83_vm0, %v65_v12, -inf  ;;  %v163_v36 = vsel %vm83_vm0, %v73_v16, -inf  ;;  %v165_v37 = vsel %vm83_vm0, %v72_v13, -inf }
   0xf   :  { %v97_v38 = vmin.f32 %v93_v27, %v95_v30  ;;  %v162_v39 = vmax.f32 %v157_v29, %v161_v35  ;;  %v164_v40 = vmax.f32 %v158_v31, %v163_v36  ;;  %v166_v41 = vmax.f32 %v159_v32, %v165_v37 }
  0x10   :  { %v167_v42 = vsel %vm83_vm0, %v74_v17, -inf }
  0x11   :  { %v98_v43 = vmin.f32 %v96_v34, %v97_v38  ;;  %v168_v44 = vmax.f32 %v160_v33, %v167_v42  ;;  %v169_v45 = vmax.f32 %v162_v39, %v164_v40 }
  0x13   :  { %99 = vmin.xlane.f32.xlu0 %v98_v43  ;;  %v170_v46 = vmax.f32 %v166_v41, %v168_v44 }
  0x15   :  { %v171_v47 = vmax.f32 %v169_v45, %v170_v46 }
  0x17   :  { %172 = vmax.xlane.f32.xlu0 %v171_v47 }
  0xa0   :  { %v100_v48 = vpop.xlane.xlu0 %99 }
  0xa1   :  { %v101_v49 = vrot.slane %v100_v48, 4 }
  0xa3   :  { %v102_v50 = vmin.f32 %v100_v48, %v101_v49 }
  0xa4   :  { %v173_v51 = vpop.xlane.xlu0 %172 }
  0xa5   :  { %v103_v52 = vrot.slane %v102_v50, 2  ;;  %v174_v53 = vrot.slane %v173_v51, 4 }
  0xa7   :  { %v175_v54 = vmax.f32 %v173_v51, %v174_v53  ;;  %v104_v55 = vmin.f32 %v102_v50, %v103_v52 }
  0xa9   :  { %v176_v56 = vrot.slane %v175_v54, 2  ;;  %v105_v57 = vrot.slane %v104_v55, 1 }
  0xab   :  { %v177_v58 = vmax.f32 %v175_v54, %v176_v56  ;;  %v106_v59 = vmin.f32 %v104_v55, %v105_v57 }
  0xad   :  { %211 = vpush %v106_v59  ;;  %v178_v60 = vrot.slane %v177_v58, 1 }
  0xaf   :  { %v179_v61 = vmax.f32 %v177_v58, %v178_v60 }
  0xb1   :  { %213 = vpush %v179_v61 }
  0xde   :  { %s212_s14 = spop %211 }
  0xdf   :  { %v108_v62 = vstv %s212_s14 }
  0xe0   :  { %110 = vst.msk [vmem:[#allocation4] sm:$0x1] %vm109_vm1, %v108_v62 }
  0xe1   :  { %231 = shalt.err (!%p228_p4)
}
  0xe2   :  { %s232_s21 = scalar_lea.hbm %s335_s1, 16 }
  0xe3   :  { %p233_p5 = scmp.ne.s32.totalorder %s335_s1, %s232_s21  ;;  %p236_p6 = scmp.lt.u32.totalorder %s232_s21, %s335_s1 }
  0xe5   :  { %p238_p7 = pnand %p236_p6, %p233_p5 }
  0xe7   :  { %241 = shalt.err (!%p238_p7)
}
  0xe8   :  { %192 = dma.vmem_to_hbm [thread:$0]  %s190_s13, 16, %s335_s1, [#allocation5]  }
  0xe9   :  { %s214_s28 = spop %213  ;;  %s242_s29 = scalar_lea.vmem %s200_s16, 16 }
  0xea   :  { %v181_v63 = vstv %s214_s28  ;;  %p243_p8 = scmp.ne.s32.totalorder %s200_s16, %s242_s29  ;;  %s246_s30 = scalar_lea.vmem %s200_s16, 32 }
  0xeb   :  { %182 = vst.msk [vmem:[#allocation6] sm:$0x1] %vm109_vm1, %v181_v63  ;;  %p247_p9 = scmp.lt.s32.totalorder %s200_s16, %s200_s16  ;;  %p248_p10 = scmp.lt.s32.totalorder %s246_s30, %s242_s29 }
  0xed   :  { %p249_p11 = por %p248_p10, %p247_p9 }
  0xef   :  { %p250_p12 = pnand %p249_p11, %p243_p8 }
  0xf1   :  { %253 = shalt.err (!%p250_p12)
}
  0xf2   :  { %s254_s5 = scalar_lea.hbm %s336_s2, 16 }
  0xf3   :  { %p255_p13 = scmp.ne.s32.totalorder %s336_s2, %s254_s5  ;;  %p258_p0 = scmp.lt.u32.totalorder %s254_s5, %s336_s2 }
  0xf5   :  { %p260_p1 = pnand %p258_p0, %p255_p13 }
  0xf7   :  { %263 = shalt.err (!%p260_p1)
}
  0xf8   :  { %202 = dma.vmem_to_hbm [thread:$0]  %s200_s16, 16, %s336_s2, [#allocation7]  }
  0xf9   :  { %264 = dma.done.wait [#allocation5], 16  }
  0xfa   :  { %265 = vsyncadd [#allocation5], 4294967280 }
  0xfb   :  { %266 = dma.done.wait [#allocation7], 16  }
  0xfc   :  { %267 = vsyncadd [#allocation7], 4294967280 }
  0xfd   :  { %209 = vsyncpa [#allocation5], 1 }
  0xfe   :  { %210 = vsyncpa [#allocation7], 1 }

</bundles_post_ra>
